<compile_context>
chip_gen: v7x
topology: tpu7x:2x2x1
jax: 0.10.0
libtpu: 0.0.40
codegen_flags: <defaults>
</compile_context>

<pallas_src>
import functools

import numpy as np
import jax
import jax.numpy as jnp
from jax.experimental import pallas as pl
from jax.experimental.pallas import tpu as pltpu


def _attention_fused_kernel(G, DG,
                            logaw_ref, roi_ref, kT_ref, v_ref,
                            qw_ref, qb_ref, cw_ref, cb_ref, out_ref):
    """Fused per-(batch, row-block) attention step.

    logaw_ref: (1, G, RB, NG)  log(max(relu(pos_fc(pe)), 1e-6)), precomputed (f32)
    roi_ref  : (1, RB, FEAT)   query rows (compute dtype)
    kT_ref   : (1, DIM1, NG)   key projection, transposed (compute dtype)
    v_ref    : (1, NG, FEAT)   value rows = nongt roi features (compute dtype)
    qw_ref   : (FEAT, DIM0)    query weight * 1/sqrt(d_k) (compute dtype)
    qb_ref   : (1, DIM0)       query bias   * 1/sqrt(d_k) (f32)
    cw_ref   : (G, FEAT, DO)   grouped 1x1 conv weight (compute dtype)
    cb_ref   : (G, 1, DO)      grouped 1x1 conv bias (f32)
    out_ref  : (1, RB, DIM2)   lane-dense output block (f32)
    """
    cdt = roi_ref.dtype
    roi = roi_ref[0]          # (RB, FEAT)
    v = v_ref[0]              # (NG, FEAT)
    kT = kT_ref[0]            # (DIM1, NG)

    # Full-width query projection on the MXU (softmax scale pre-folded into qw/qb).
    q = (jnp.dot(roi, qw_ref[...], preferred_element_type=jnp.float32)
         + qb_ref[...]).astype(cdt)                                        # (RB, DIM0)

    outs = []
    # TODO(synk): for large G (e.g. 16 in production) switch this static unroll to
    # lax.fori_loop(..., unroll=2-4) if a bundle dump shows spill vld/vst traffic.
    for g in range(G):
        # (RB, DG) @ (DG, NG) — sublane-aligned slice of K^T, no per-group transpose.
        aff = jnp.dot(q[:, g * DG:(g + 1) * DG], kT[g * DG:(g + 1) * DG, :],
                      preferred_element_type=jnp.float32)                  # (RB, NG)

        # stable softmax over NG, f32 throughout (EUP reciprocal for the normalization)
        w = logaw_ref[0, g] + aff
        w = w - jnp.max(w, axis=-1, keepdims=True)
        p = jnp.exp(w)
        sm = p * pl.reciprocal(jnp.sum(p, axis=-1, keepdims=True), approx=True)

        # value aggregation + this group's slice of the grouped 1x1 conv
        out_t = jnp.dot(sm.astype(cdt), v, preferred_element_type=jnp.float32)   # (RB, FEAT)
        out_g = (jnp.dot(out_t.astype(cdt), cw_ref[g],
                         preferred_element_type=jnp.float32) + cb_ref[g])        # (RB, DO)
        outs.append(out_g)

    # One lane-dense store of the whole (RB, DIM2) block (groups along the feature axis).
    out_ref[0] = jnp.concatenate(outs, axis=-1).astype(out_ref.dtype)


def attention_forward(roi_feat, position_embedding, params, *, fc_dim, dim,
                      row_block=None, compute_dtype=jnp.float32):
    """Forward pass of AttentionModule.

    roi_feat:            (B, NB, FEAT)
    position_embedding:  (B, NB, NG, EMB)
    returns:             (B, NB, dim[2]) float32
    """
    B, NB, FEAT = roi_feat.shape
    _, _, NG, EMB = position_embedding.shape
    G = fc_dim
    DIM0, DIM1, DIM2 = dim
    assert DIM0 == DIM1, "Matrix multiply requires same dimensions!"
    assert DIM0 % G == 0 and DIM2 % G == 0
    DG = DIM1 // G
    DO = DIM2 // G

    # Row tiling of num_boxes. Conservative default sized for v7x's 64 MiB VMEM;
    # on v6e / v5e (128 MiB physical) row_block can be raised to 256-512.
    if row_block is None:
        row_block = NB if NB <= 128 else 128
    assert NB % row_block == 0, "row_block must divide num_boxes"
    RB = row_block

    f32 = jnp.float32
    nongt = roi_feat[:, :NG, :]

    # ---------------- XLA-side precompute (perf review) ----------------
    # Position gate, log form, group-major with NG last: (B, G, NB, NG).
    gate = jax.nn.relu(
        jnp.einsum("bnme,ge->bnmg", position_embedding.astype(f32),
                   params["pos_w"].astype(f32)) + params["pos_b"].astype(f32))
    log_aw = jnp.log(jnp.maximum(gate, 1e-6)).transpose(0, 3, 1, 2)

    # Key projection K^T, computed once per batch (not once per row block) and
    # pre-transposed so the per-group affinity needs no in-kernel transpose.
    kT = (jnp.einsum("bmf,df->bdm", nongt.astype(f32), params["k_w"].astype(f32))
          + params["k_b"].astype(f32)[None, :, None])                   # (B, DIM1, NG)

    # Fold the 1/sqrt(d_k) softmax scale into the query projection.
    scale = np.float32(1.0 / np.sqrt(DIM1 // G))
    qw_t = params["q_w"].astype(f32).T * scale                          # (FEAT, DIM0)
    qb = (params["q_b"].astype(f32) * scale).reshape(1, DIM0)

    # Grouped 1x1 conv as per-group (FEAT, DO) matmuls.
    cw3 = params["conv_w"].astype(f32).reshape(G, DO, FEAT).transpose(0, 2, 1)   # (G, FEAT, DO)
    cb3 = params["conv_b"].astype(f32).reshape(G, 1, DO)

    # MXU operands in the compute dtype (bf16 recommended on v5e/v6e/v7x);
    # softmax / bias / gate math stays f32 inside the kernel.
    cdt = compute_dtype
    roi_in = roi_feat.astype(cdt)
    v_in = nongt.astype(cdt)
    kT_in = kT.astype(cdt)
    qw_in = qw_t.astype(cdt)
    cw_in = cw3.astype(cdt)

    kernel = functools.partial(_attention_fused_kernel, G, DG)

    zero2 = lambda b, r: (0, 0)
    zero3 = lambda b, r: (0, 0, 0)

    # TODO(synk): once pipeline_mode=pl.Buffered(1) is verified on the target jax build,
    # single-buffer the constant-index weight specs below to halve their VMEM footprint.
    return pl.pallas_call(
        kernel,
        out_shape=jax.ShapeDtypeStruct((B, NB, DIM2), jnp.float32),
        grid=(B, NB // RB),
        in_specs=[
            pl.BlockSpec((1, G, RB, NG), lambda b, r: (b, 0, r, 0)),   # log position gate
            pl.BlockSpec((1, RB, FEAT), lambda b, r: (b, r, 0)),       # roi rows
            pl.BlockSpec((1, DIM1, NG), lambda b, r: (b, 0, 0)),       # K^T (per batch, reused over r)
            pl.BlockSpec((1, NG, FEAT), lambda b, r: (b, 0, 0)),       # values (per batch)
            pl.BlockSpec((FEAT, DIM0), zero2),                         # scaled query weight
            pl.BlockSpec((1, DIM0), zero2),                            # scaled query bias
            pl.BlockSpec((G, FEAT, DO), zero3),                        # grouped conv weight
            pl.BlockSpec((G, 1, DO), zero3),                           # grouped conv bias
        ],
        out_specs=pl.BlockSpec((1, RB, DIM2), lambda b, r: (b, r, 0)),
        compiler_params=pltpu.CompilerParams(
            dimension_semantics=("parallel", "parallel"),
            vmem_limit_bytes=64 * 1024 * 1024),
    )(log_aw, roi_in, kT_in, v_in, qw_in, qb, cw_in, cb3)


def attention_reference(roi_feat, position_embedding, params, *, fc_dim, dim):
    """Pure-JAX mirror of the PyTorch forward (for validation)."""
    B, NB, FEAT = roi_feat.shape
    _, _, NG, EMB = position_embedding.shape
    G = fc_dim
    DG = dim[0] // G
    DO = dim[2] // G
    nongt = roi_feat[:, :NG, :]
    pe = position_embedding.reshape(B, NB * NG, EMB)
    aff_weight = jax.nn.relu(pe @ params["pos_w"].T + params["pos_b"])
    aff_weight = aff_weight.reshape(B, NB, NG, G).transpose(0, 1, 3, 2)     # (B,NB,G,NG)
    q = (roi_feat @ params["q_w"].T + params["q_b"]
         ).reshape(B, NB, G, DG).transpose(0, 2, 1, 3)                      # (B,G,NB,DG)
    k = (nongt @ params["k_w"].T + params["k_b"]
         ).reshape(B, NG, G, DG).transpose(0, 2, 1, 3)                      # (B,G,NG,DG)
    aff = jnp.einsum("bgnd,bgmd->bgnm", q, k)
    aff_scaled = (aff * (1.0 / np.sqrt(dim[1] // G))).transpose(0, 2, 1, 3)  # (B,NB,G,NG)
    weighted = jnp.log(jnp.maximum(aff_weight, 1e-6)) + aff_scaled
    sm = jax.nn.softmax(weighted, axis=3).reshape(B, NB * G, NG)
    out_t = jnp.einsum("bkm,bmf->bkf", sm, nongt).reshape(B, NB, G, FEAT)
    cw = params["conv_w"].reshape(G, DO, FEAT)
    out = jnp.einsum("bngf,gof->bngo", out_t, cw) + params["conv_b"].reshape(1, 1, G, DO)
    return out.reshape(B, NB, dim[2])


if __name__ == "__main__":
    # small shapes consistent with the module
    B, NB, NG = 2, 8, 8          # batch_images, num_boxes, nongt_dim (<= num_boxes)
    EMB, FEAT = 16, 32           # emb_dim, feat_dim
    FC_DIM = GROUPS = 4
    DIM = (64, 64, 64)           # (query_dim, key_dim, value_dim); divisible by groups

    key = jax.random.PRNGKey(0)
    keys = jax.random.split(key, 6)
    # deterministic params matching __init__'s init scheme:
    # pos_fc.weight ~ N(0,1), query/key/conv weights ~ N(0,0.01), all biases = 0
    params = {
        "pos_w": jax.random.normal(keys[0], (FC_DIM, EMB), jnp.float32),
        "pos_b": jnp.zeros((FC_DIM,), jnp.float32),
        "q_w": 0.01 * jax.random.normal(keys[1], (DIM[0], FEAT), jnp.float32),
        "q_b": jnp.zeros((DIM[0],), jnp.float32),
        "k_w": 0.01 * jax.random.normal(keys[2], (DIM[1], FEAT), jnp.float32),
        "k_b": jnp.zeros((DIM[1],), jnp.float32),
        # Conv2d(fc_dim*feat, dim2, (1,1), groups=fc_dim) weight is (dim2, feat, 1, 1)
        "conv_w": 0.01 * jax.random.normal(keys[3], (DIM[2], FEAT), jnp.float32),
        "conv_b": jnp.zeros((DIM[2],), jnp.float32),
    }

    roi_feat = jax.random.normal(keys[4], (B, NB, FEAT), jnp.float32)
    position_embedding = jax.random.normal(keys[5], (B, NB, NG, EMB), jnp.float32)

    ref = attention_reference(roi_feat, position_embedding, params, fc_dim=FC_DIM, dim=DIM)

    # f32 compute path (default)
    out_f32 = attention_forward(roi_feat, position_embedding, params,
                                fc_dim=FC_DIM, dim=DIM)
    out_f32 = jax.block_until_ready(out_f32)
    np.testing.assert_allclose(np.asarray(out_f32), np.asarray(ref), rtol=5e-3, atol=1e-3)
    assert out_f32.shape == (B, NB, DIM[2])

    # bf16 MXU-operand path (f32 accumulation / f32 softmax) — looser tolerance.
    out_bf16 = attention_forward(roi_feat, position_embedding, params,
                                 fc_dim=FC_DIM, dim=DIM, compute_dtype=jnp.bfloat16)
    out_bf16 = jax.block_until_ready(out_bf16)
    np.testing.assert_allclose(np.asarray(out_bf16), np.asarray(ref), rtol=5e-2, atol=5e-3)

    print("KERNEL_OK")
</pallas_src>

<mosaic_0001>
module attributes {stable_mosaic.version = 11 : i64} {
  func.func @_attention_fused_kernel(%arg0: i32, %arg1: i32, %arg2: memref<1x4x8x8xf32, #tpu.memory_space<vmem>>, %arg3: memref<1x8x32xf32, #tpu.memory_space<vmem>>, %arg4: memref<1x64x8xf32, #tpu.memory_space<vmem>>, %arg5: memref<1x8x32xf32, #tpu.memory_space<vmem>>, %arg6: memref<32x64xf32, #tpu.memory_space<vmem>>, %arg7: memref<1x64xf32, #tpu.memory_space<vmem>>, %arg8: memref<4x32x16xf32, #tpu.memory_space<vmem>>, %arg9: memref<4x1x16xf32, #tpu.memory_space<vmem>>, %arg10: memref<1x8x64xf32, #tpu.memory_space<vmem>>) attributes {dimension_semantics = [#tpu.dimension_semantics<parallel>, #tpu.dimension_semantics<parallel>], iteration_bounds = array<i64: 2, 1>, scalar_prefetch = 0 : i64, scratch_operands = 0 : i64, tpu.core_type = #tpu.core_type<tc>, window_params = [{transform_indices = @transform_0, window_bounds = array<i64: 1, 4, 8, 8>}, {transform_indices = @transform_1, window_bounds = array<i64: 1, 8, 32>}, {transform_indices = @transform_2, window_bounds = array<i64: 1, 64, 8>}, {transform_indices = @transform_3, window_bounds = array<i64: 1, 8, 32>}, {pipeline_mode = #tpu.pipeline_mode<synchronous>, transform_indices = @transform_4, window_bounds = array<i64: 32, 64>}, {pipeline_mode = #tpu.pipeline_mode<synchronous>, transform_indices = @transform_5, window_bounds = array<i64: 1, 64>}, {pipeline_mode = #tpu.pipeline_mode<synchronous>, transform_indices = @transform_6, window_bounds = array<i64: 4, 32, 16>}, {pipeline_mode = #tpu.pipeline_mode<synchronous>, transform_indices = @transform_7, window_bounds = array<i64: 4, 1, 16>}, {transform_indices = @transform_8, window_bounds = array<i64: 1, 8, 64>}]} {
    %c0 = arith.constant 0 : index
    %c0_0 = arith.constant 0 : index
    %c0_1 = arith.constant 0 : index
    %0 = vector.load %arg3[%c0, %c0_0, %c0_1] : memref<1x8x32xf32, #tpu.memory_space<vmem>>, vector<1x8x32xf32>
    %1 = vector.shape_cast %0 : vector<1x8x32xf32> to vector<8x32xf32>
    %c0_2 = arith.constant 0 : index
    %c0_3 = arith.constant 0 : index
    %c0_4 = arith.constant 0 : index
    %2 = vector.load %arg5[%c0_2, %c0_3, %c0_4] : memref<1x8x32xf32, #tpu.memory_space<vmem>>, vector<1x8x32xf32>
    %3 = vector.shape_cast %2 : vector<1x8x32xf32> to vector<8x32xf32>
    %c0_5 = arith.constant 0 : index
    %c0_6 = arith.constant 0 : index
    %c0_7 = arith.constant 0 : index
    %4 = vector.load %arg4[%c0_5, %c0_6, %c0_7] : memref<1x64x8xf32, #tpu.memory_space<vmem>>, vector<1x64x8xf32>
    %5 = vector.shape_cast %4 : vector<1x64x8xf32> to vector<64x8xf32>
    %c0_8 = arith.constant 0 : index
    %c0_9 = arith.constant 0 : index
    %6 = vector.load %arg6[%c0_8, %c0_9] : memref<32x64xf32, #tpu.memory_space<vmem>>, vector<32x64xf32>
    %cst = arith.constant dense<0.000000e+00> : vector<8x64xf32>
    %7 = tpu.matmul %1, %6, %cst {dimension_numbers = #tpu.dot_dimension_numbers<[1], [0], [0], [1], [0, 0, 1, 1], [], []>} : vector<8x32xf32>, vector<32x64xf32>, vector<8x64xf32> -> vector<8x64xf32>
    %c0_10 = arith.constant 0 : index
    %c0_11 = arith.constant 0 : index
    %8 = vector.load %arg7[%c0_10, %c0_11] : memref<1x64xf32, #tpu.memory_space<vmem>>, vector<1x64xf32>
    %9 = vector.broadcast %8 : vector<1x64xf32> to vector<8x64xf32>
    %10 = arith.addf %7, %9 : vector<8x64xf32>
    %11 = vector.extract_strided_slice %10 {offsets = [0, 0], sizes = [8, 16], strides = [1, 1]} : vector<8x64xf32> to vector<8x16xf32>
    %12 = vector.extract_strided_slice %5 {offsets = [0, 0], sizes = [16, 8], strides = [1, 1]} : vector<64x8xf32> to vector<16x8xf32>
    %cst_12 = arith.constant dense<0.000000e+00> : vector<8x8xf32>
    %13 = tpu.matmul %11, %12, %cst_12 {dimension_numbers = #tpu.dot_dimension_numbers<[1], [0], [0], [1], [0, 0, 1, 1], [], []>} : vector<8x16xf32>, vector<16x8xf32>, vector<8x8xf32> -> vector<8x8xf32>
    %c0_13 = arith.constant 0 : index
    %c0_14 = arith.constant 0 : index
    %c0_15 = arith.constant 0 : index
    %c0_16 = arith.constant 0 : index
    %14 = vector.load %arg2[%c0_13, %c0_14, %c0_15, %c0_16] : memref<1x4x8x8xf32, #tpu.memory_space<vmem>>, vector<1x1x8x8xf32>
    %15 = vector.shape_cast %14 : vector<1x1x8x8xf32> to vector<8x8xf32>
    %16 = arith.addf %15, %13 : vector<8x8xf32>
    %cst_17 = arith.constant dense<0xFF800000> : vector<8xf32>
    %17 = vector.multi_reduction <maximumf>, %16, %cst_17 [1] : vector<8x8xf32> to vector<8xf32>
    %18 = vector.shape_cast %17 : vector<8xf32> to vector<8x1xf32>
    %19 = vector.broadcast %18 : vector<8x1xf32> to vector<8x8xf32>
    %20 = arith.subf %16, %19 : vector<8x8xf32>
    %21 = math.exp %20 : vector<8x8xf32>
    %cst_18 = arith.constant dense<0.000000e+00> : vector<8xf32>
    %22 = vector.multi_reduction <add>, %21, %cst_18 [1] : vector<8x8xf32> to vector<8xf32>
    %23 = vector.shape_cast %22 : vector<8xf32> to vector<8x1xf32>
    %24 = tpu.reciprocal %23 {approx = true} : vector<8x1xf32> -> vector<8x1xf32>
    %25 = vector.broadcast %24 : vector<8x1xf32> to vector<8x8xf32>
    %26 = arith.mulf %21, %25 : vector<8x8xf32>
    %cst_19 = arith.constant dense<0.000000e+00> : vector<8x32xf32>
    %27 = tpu.matmul %26, %3, %cst_19 {dimension_numbers = #tpu.dot_dimension_numbers<[1], [0], [0], [1], [0, 0, 1, 1], [], []>} : vector<8x8xf32>, vector<8x32xf32>, vector<8x32xf32> -> vector<8x32xf32>
    %c0_20 = arith.constant 0 : index
    %c0_21 = arith.constant 0 : index
    %c0_22 = arith.constant 0 : index
    %28 = vector.load %arg8[%c0_20, %c0_21, %c0_22] : memref<4x32x16xf32, #tpu.memory_space<vmem>>, vector<1x32x16xf32>
    %29 = vector.shape_cast %28 : vector<1x32x16xf32> to vector<32x16xf32>
    %cst_23 = arith.constant dense<0.000000e+00> : vector<8x16xf32>
    %30 = tpu.matmul %27, %29, %cst_23 {dimension_numbers = #tpu.dot_dimension_numbers<[1], [0], [0], [1], [0, 0, 1, 1], [], []>} : vector<8x32xf32>, vector<32x16xf32>, vector<8x16xf32> -> vector<8x16xf32>
    %c0_24 = arith.constant 0 : index
    %c0_25 = arith.constant 0 : index
    %c0_26 = arith.constant 0 : index
    %31 = vector.load %arg9[%c0_24, %c0_25, %c0_26] : memref<4x1x16xf32, #tpu.memory_space<vmem>>, vector<1x1x16xf32>
    %32 = vector.shape_cast %31 : vector<1x1x16xf32> to vector<1x16xf32>
    %33 = vector.broadcast %32 : vector<1x16xf32> to vector<8x16xf32>
    %34 = arith.addf %30, %33 : vector<8x16xf32>
    %35 = vector.extract_strided_slice %10 {offsets = [0, 16], sizes = [8, 16], strides = [1, 1]} : vector<8x64xf32> to vector<8x16xf32>
    %36 = vector.extract_strided_slice %5 {offsets = [16, 0], sizes = [16, 8], strides = [1, 1]} : vector<64x8xf32> to vector<16x8xf32>
    %cst_27 = arith.constant dense<0.000000e+00> : vector<8x8xf32>
    %37 = tpu.matmul %35, %36, %cst_27 {dimension_numbers = #tpu.dot_dimension_numbers<[1], [0], [0], [1], [0, 0, 1, 1], [], []>} : vector<8x16xf32>, vector<16x8xf32>, vector<8x8xf32> -> vector<8x8xf32>
    %c0_28 = arith.constant 0 : index
    %c1 = arith.constant 1 : index
    %c0_29 = arith.constant 0 : index
    %c0_30 = arith.constant 0 : index
    %38 = vector.load %arg2[%c0_28, %c1, %c0_29, %c0_30] : memref<1x4x8x8xf32, #tpu.memory_space<vmem>>, vector<1x1x8x8xf32>
    %39 = vector.shape_cast %38 : vector<1x1x8x8xf32> to vector<8x8xf32>
    %40 = arith.addf %39, %37 : vector<8x8xf32>
    %cst_31 = arith.constant dense<0xFF800000> : vector<8xf32>
    %41 = vector.multi_reduction <maximumf>, %40, %cst_31 [1] : vector<8x8xf32> to vector<8xf32>
    %42 = vector.shape_cast %41 : vector<8xf32> to vector<8x1xf32>
    %43 = vector.broadcast %42 : vector<8x1xf32> to vector<8x8xf32>
    %44 = arith.subf %40, %43 : vector<8x8xf32>
    %45 = math.exp %44 : vector<8x8xf32>
    %cst_32 = arith.constant dense<0.000000e+00> : vector<8xf32>
    %46 = vector.multi_reduction <add>, %45, %cst_32 [1] : vector<8x8xf32> to vector<8xf32>
    %47 = vector.shape_cast %46 : vector<8xf32> to vector<8x1xf32>
    %48 = tpu.reciprocal %47 {approx = true} : vector<8x1xf32> -> vector<8x1xf32>
    %49 = vector.broadcast %48 : vector<8x1xf32> to vector<8x8xf32>
    %50 = arith.mulf %45, %49 : vector<8x8xf32>
    %cst_33 = arith.constant dense<0.000000e+00> : vector<8x32xf32>
    %51 = tpu.matmul %50, %3, %cst_33 {dimension_numbers = #tpu.dot_dimension_numbers<[1], [0], [0], [1], [0, 0, 1, 1], [], []>} : vector<8x8xf32>, vector<8x32xf32>, vector<8x32xf32> -> vector<8x32xf32>
    %c1_34 = arith.constant 1 : index
    %c0_35 = arith.constant 0 : index
    %c0_36 = arith.constant 0 : index
    %52 = vector.load %arg8[%c1_34, %c0_35, %c0_36] : memref<4x32x16xf32, #tpu.memory_space<vmem>>, vector<1x32x16xf32>
    %53 = vector.shape_cast %52 : vector<1x32x16xf32> to vector<32x16xf32>
    %cst_37 = arith.constant dense<0.000000e+00> : vector<8x16xf32>
    %54 = tpu.matmul %51, %53, %cst_37 {dimension_numbers = #tpu.dot_dimension_numbers<[1], [0], [0], [1], [0, 0, 1, 1], [], []>} : vector<8x32xf32>, vector<32x16xf32>, vector<8x16xf32> -> vector<8x16xf32>
    %c1_38 = arith.constant 1 : index
    %c0_39 = arith.constant 0 : index
    %c0_40 = arith.constant 0 : index
    %55 = vector.load %arg9[%c1_38, %c0_39, %c0_40] : memref<4x1x16xf32, #tpu.memory_space<vmem>>, vector<1x1x16xf32>
    %56 = vector.shape_cast %55 : vector<1x1x16xf32> to vector<1x16xf32>
    %57 = vector.broadcast %56 : vector<1x16xf32> to vector<8x16xf32>
    %58 = arith.addf %54, %57 : vector<8x16xf32>
    %59 = vector.extract_strided_slice %10 {offsets = [0, 32], sizes = [8, 16], strides = [1, 1]} : vector<8x64xf32> to vector<8x16xf32>
    %60 = vector.extract_strided_slice %5 {offsets = [32, 0], sizes = [16, 8], strides = [1, 1]} : vector<64x8xf32> to vector<16x8xf32>
    %cst_41 = arith.constant dense<0.000000e+00> : vector<8x8xf32>
    %61 = tpu.matmul %59, %60, %cst_41 {dimension_numbers = #tpu.dot_dimension_numbers<[1], [0], [0], [1], [0, 0, 1, 1], [], []>} : vector<8x16xf32>, vector<16x8xf32>, vector<8x8xf32> -> vector<8x8xf32>
    %c0_42 = arith.constant 0 : index
    %c2 = arith.constant 2 : index
    %c0_43 = arith.constant 0 : index
    %c0_44 = arith.constant 0 : index
    %62 = vector.load %arg2[%c0_42, %c2, %c0_43, %c0_44] : memref<1x4x8x8xf32, #tpu.memory_space<vmem>>, vector<1x1x8x8xf32>
    %63 = vector.shape_cast %62 : vector<1x1x8x8xf32> to vector<8x8xf32>
    %64 = arith.addf %63, %61 : vector<8x8xf32>
    %cst_45 = arith.constant dense<0xFF800000> : vector<8xf32>
    %65 = vector.multi_reduction <maximumf>, %64, %cst_45 [1] : vector<8x8xf32> to vector<8xf32>
    %66 = vector.shape_cast %65 : vector<8xf32> to vector<8x1xf32>
    %67 = vector.broadcast %66 : vector<8x1xf32> to vector<8x8xf32>
    %68 = arith.subf %64, %67 : vector<8x8xf32>
    %69 = math.exp %68 : vector<8x8xf32>
    %cst_46 = arith.constant dense<0.000000e+00> : vector<8xf32>
    %70 = vector.multi_reduction <add>, %69, %cst_46 [1] : vector<8x8xf32> to vector<8xf32>
    %71 = vector.shape_cast %70 : vector<8xf32> to vector<8x1xf32>
    %72 = tpu.reciprocal %71 {approx = true} : vector<8x1xf32> -> vector<8x1xf32>
    %73 = vector.broadcast %72 : vector<8x1xf32> to vector<8x8xf32>
    %74 = arith.mulf %69, %73 : vector<8x8xf32>
    %cst_47 = arith.constant dense<0.000000e+00> : vector<8x32xf32>
    %75 = tpu.matmul %74, %3, %cst_47 {dimension_numbers = #tpu.dot_dimension_numbers<[1], [0], [0], [1], [0, 0, 1, 1], [], []>} : vector<8x8xf32>, vector<8x32xf32>, vector<8x32xf32> -> vector<8x32xf32>
    %c2_48 = arith.constant 2 : index
    %c0_49 = arith.constant 0 : index
    %c0_50 = arith.constant 0 : index
    %76 = vector.load %arg8[%c2_48, %c0_49, %c0_50] : memref<4x32x16xf32, #tpu.memory_space<vmem>>, vector<1x32x16xf32>
    %77 = vector.shape_cast %76 : vector<1x32x16xf32> to vector<32x16xf32>
    %cst_51 = arith.constant dense<0.000000e+00> : vector<8x16xf32>
    %78 = tpu.matmul %75, %77, %cst_51 {dimension_numbers = #tpu.dot_dimension_numbers<[1], [0], [0], [1], [0, 0, 1, 1], [], []>} : vector<8x32xf32>, vector<32x16xf32>, vector<8x16xf32> -> vector<8x16xf32>
    %c2_52 = arith.constant 2 : index
    %c0_53 = arith.constant 0 : index
    %c0_54 = arith.constant 0 : index
    %79 = vector.load %arg9[%c2_52, %c0_53, %c0_54] : memref<4x1x16xf32, #tpu.memory_space<vmem>>, vector<1x1x16xf32>
    %80 = vector.shape_cast %79 : vector<1x1x16xf32> to vector<1x16xf32>
    %81 = vector.broadcast %80 : vector<1x16xf32> to vector<8x16xf32>
    %82 = arith.addf %78, %81 : vector<8x16xf32>
    %83 = vector.extract_strided_slice %10 {offsets = [0, 48], sizes = [8, 16], strides = [1, 1]} : vector<8x64xf32> to vector<8x16xf32>
    %84 = vector.extract_strided_slice %5 {offsets = [48, 0], sizes = [16, 8], strides = [1, 1]} : vector<64x8xf32> to vector<16x8xf32>
    %cst_55 = arith.constant dense<0.000000e+00> : vector<8x8xf32>
    %85 = tpu.matmul %83, %84, %cst_55 {dimension_numbers = #tpu.dot_dimension_numbers<[1], [0], [0], [1], [0, 0, 1, 1], [], []>} : vector<8x16xf32>, vector<16x8xf32>, vector<8x8xf32> -> vector<8x8xf32>
    %c0_56 = arith.constant 0 : index
    %c3 = arith.constant 3 : index
    %c0_57 = arith.constant 0 : index
    %c0_58 = arith.constant 0 : index
    %86 = vector.load %arg2[%c0_56, %c3, %c0_57, %c0_58] : memref<1x4x8x8xf32, #tpu.memory_space<vmem>>, vector<1x1x8x8xf32>
    %87 = vector.shape_cast %86 : vector<1x1x8x8xf32> to vector<8x8xf32>
    %88 = arith.addf %87, %85 : vector<8x8xf32>
    %cst_59 = arith.constant dense<0xFF800000> : vector<8xf32>
    %89 = vector.multi_reduction <maximumf>, %88, %cst_59 [1] : vector<8x8xf32> to vector<8xf32>
    %90 = vector.shape_cast %89 : vector<8xf32> to vector<8x1xf32>
    %91 = vector.broadcast %90 : vector<8x1xf32> to vector<8x8xf32>
    %92 = arith.subf %88, %91 : vector<8x8xf32>
    %93 = math.exp %92 : vector<8x8xf32>
    %cst_60 = arith.constant dense<0.000000e+00> : vector<8xf32>
    %94 = vector.multi_reduction <add>, %93, %cst_60 [1] : vector<8x8xf32> to vector<8xf32>
    %95 = vector.shape_cast %94 : vector<8xf32> to vector<8x1xf32>
    %96 = tpu.reciprocal %95 {approx = true} : vector<8x1xf32> -> vector<8x1xf32>
    %97 = vector.broadcast %96 : vector<8x1xf32> to vector<8x8xf32>
    %98 = arith.mulf %93, %97 : vector<8x8xf32>
    %cst_61 = arith.constant dense<0.000000e+00> : vector<8x32xf32>
    %99 = tpu.matmul %98, %3, %cst_61 {dimension_numbers = #tpu.dot_dimension_numbers<[1], [0], [0], [1], [0, 0, 1, 1], [], []>} : vector<8x8xf32>, vector<8x32xf32>, vector<8x32xf32> -> vector<8x32xf32>
    %c3_62 = arith.constant 3 : index
    %c0_63 = arith.constant 0 : index
    %c0_64 = arith.constant 0 : index
    %100 = vector.load %arg8[%c3_62, %c0_63, %c0_64] : memref<4x32x16xf32, #tpu.memory_space<vmem>>, vector<1x32x16xf32>
    %101 = vector.shape_cast %100 : vector<1x32x16xf32> to vector<32x16xf32>
    %cst_65 = arith.constant dense<0.000000e+00> : vector<8x16xf32>
    %102 = tpu.matmul %99, %101, %cst_65 {dimension_numbers = #tpu.dot_dimension_numbers<[1], [0], [0], [1], [0, 0, 1, 1], [], []>} : vector<8x32xf32>, vector<32x16xf32>, vector<8x16xf32> -> vector<8x16xf32>
    %c3_66 = arith.constant 3 : index
    %c0_67 = arith.constant 0 : index
    %c0_68 = arith.constant 0 : index
    %103 = vector.load %arg9[%c3_66, %c0_67, %c0_68] : memref<4x1x16xf32, #tpu.memory_space<vmem>>, vector<1x1x16xf32>
    %104 = vector.shape_cast %103 : vector<1x1x16xf32> to vector<1x16xf32>
    %105 = vector.broadcast %104 : vector<1x16xf32> to vector<8x16xf32>
    %106 = arith.addf %102, %105 : vector<8x16xf32>
    %107 = tpu.concatenate %34, %58, %82, %106 in 1 : vector<8x16xf32>, vector<8x16xf32>, vector<8x16xf32>, vector<8x16xf32> -> vector<8x64xf32>
    %c0_69 = arith.constant 0 : index
    %c0_70 = arith.constant 0 : index
    %c0_71 = arith.constant 0 : index
    %108 = vector.load %arg10[%c0_69, %c0_70, %c0_71] : memref<1x8x64xf32, #tpu.memory_space<vmem>>, vector<1x8x64xf32>
    %109 = vector.shape_cast %108 : vector<1x8x64xf32> to vector<8x64xf32>
    %110 = vector.shape_cast %107 : vector<8x64xf32> to vector<1x8x64xf32>
    tpu.vector_store %arg10[%c0_69, %c0_70, %c0_71], %110 {strides = array<i32>} : memref<1x8x64xf32, #tpu.memory_space<vmem>>, vector<1x8x64xf32>,
    return
  }
  func.func @transform_0(%arg0: i32, %arg1: i32) -> (i32, i32, i32, i32) {
    %c0_i32 = arith.constant 0 : i32
    %c0_i32_0 = arith.constant 0 : i32
    %c0_i32_1 = arith.constant 0 : i32
    return %arg0, %c0_i32, %arg1, %c0_i32_0 : i32, i32, i32, i32
  }
  func.func @transform_1(%arg0: i32, %arg1: i32) -> (i32, i32, i32) {
    %c0_i32 = arith.constant 0 : i32
    %c0_i32_0 = arith.constant 0 : i32
    return %arg0, %arg1, %c0_i32 : i32, i32, i32
  }
  func.func @transform_2(%arg0: i32, %arg1: i32) -> (i32, i32, i32) {
    %c0_i32 = arith.constant 0 : i32
    %c0_i32_0 = arith.constant 0 : i32
    %c0_i32_1 = arith.constant 0 : i32
    return %arg0, %c0_i32, %c0_i32_0 : i32, i32, i32
  }
  func.func @transform_3(%arg0: i32, %arg1: i32) -> (i32, i32, i32) {
    %c0_i32 = arith.constant 0 : i32
    %c0_i32_0 = arith.constant 0 : i32
    %c0_i32_1 = arith.constant 0 : i32
    return %arg0, %c0_i32, %c0_i32_0 : i32, i32, i32
  }
  func.func @transform_4(%arg0: i32, %arg1: i32) -> (i32, i32) {
    %c0_i32 = arith.constant 0 : i32
    %c0_i32_0 = arith.constant 0 : i32
    %c0_i32_1 = arith.constant 0 : i32
    return %c0_i32, %c0_i32_0 : i32, i32
  }
  func.func @transform_5(%arg0: i32, %arg1: i32) -> (i32, i32) {
    %c0_i32 = arith.constant 0 : i32
    %c0_i32_0 = arith.constant 0 : i32
    %c0_i32_1 = arith.constant 0 : i32
    return %c0_i32, %c0_i32_0 : i32, i32
  }
  func.func @transform_6(%arg0: i32, %arg1: i32) -> (i32, i32, i32) {
    %c0_i32 = arith.constant 0 : i32
    %c0_i32_0 = arith.constant 0 : i32
    %c0_i32_1 = arith.constant 0 : i32
    %c0_i32_2 = arith.constant 0 : i32
    return %c0_i32, %c0_i32_0, %c0_i32_1 : i32, i32, i32
  }
  func.func @transform_7(%arg0: i32, %arg1: i32) -> (i32, i32, i32) {
    %c0_i32 = arith.constant 0 : i32
    %c0_i32_0 = arith.constant 0 : i32
    %c0_i32_1 = arith.constant 0 : i32
    %c0_i32_2 = arith.constant 0 : i32
    return %c0_i32, %c0_i32_0, %c0_i32_1 : i32, i32, i32
  }
  func.func @transform_8(%arg0: i32, %arg1: i32) -> (i32, i32, i32) {
    %c0_i32 = arith.constant 0 : i32
    %c0_i32_0 = arith.constant 0 : i32
    return %arg0, %arg1, %c0_i32 : i32, i32, i32
  }
}

</mosaic_0001>

<bundles_post_ra>
// kernel: tpu_custom_call.1
= control target key start
LH: loop header
LB: loop body
LE: loop exit
PB: predicated region body
PF: predicated region fallthrough
CT: control target
= control target key end

     0   :  { %s3146_s0 = inlined_call_operand.hbm [shape: f32[2,4,8,8], index: 0, kind: input, shape index: {}]   ;;  %s3147_s1 = inlined_call_operand.hbm [shape: f32[2,8,32], index: 1, kind: input, shape index: {}]   ;;  %s3148_s2 = inlined_call_operand.hbm [shape: f32[2,64,8], index: 2, kind: input, shape index: {}]   ;;  %s3149_s3 = inlined_call_operand.hbm [shape: f32[2,8,32], index: 3, kind: input, shape index: {}]   ;;  %s3150_s4 = inlined_call_operand.hbm [shape: f32[32,64], index: 4, kind: input, shape index: {}]   ;;  %s3151_s5 = inlined_call_operand.hbm [shape: f32[1,64], index: 5, kind: input, shape index: {}]   ;;  %s3152_s6 = inlined_call_operand.hbm [shape: f32[4,32,16], index: 6, kind: input, shape index: {}]   ;;  %s3153_s7 = inlined_call_operand.hbm [shape: f32[4,1,16], index: 7, kind: input, shape index: {}]   ;;  %s3154_s8 = inlined_call_operand.hbm [shape: f32[2,8,64], index: 8, kind: output, shape index: {}]  }
   0x1   :  { %3182 = sst [smem:[#allocation32_spill]] %s3147_s1 }
   0x2   :  { %3183 = sst [smem:[#allocation33_spill]] %s3150_s4 }
   0x3   :  { %3184 = sst [smem:[#allocation34_spill]] %s3151_s5 }
   0x4   :  { %3185 = sst [smem:[#allocation35_spill]] %s3152_s6 }
   0x5   :  { %3186 = sst [smem:[#allocation36_spill]] %s3154_s8 }
   0x6   :  { %13 = vsyncpa [#allocation3], 0 }
   0x7   :  { %15 = vsyncpa [#allocation3 + $0x1], 0 }
   0x8   :  { %16 = vsyncpa [#allocation6], 0 }
   0x9   :  { %18 = vsyncpa [#allocation6 + $0x1], 0 }
   0xa   :  { %19 = vsyncpa [#allocation9], 0 }
   0xb   :  { %21 = vsyncpa [#allocation9 + $0x1], 0 }
   0xc   :  { %22 = vsyncpa [#allocation12], 0 }
   0xd   :  { %23 = vsyncpa [#allocation15], 0 }
   0xe   :  { %24 = vsyncpa [#allocation4], 0 }
   0xf   :  { %26 = vsyncpa [#allocation4 + $0x1], 0  ;;  %s2606_s27 = smov 0   ;;  %s2608_s28 = smov 0  }
  0x10   :  { %s2610_s29 = smov 0   ;;  %s2612_s30 = smov 0  }
  0x11   :  { %s2614_s9 = smov 0   ;;  %s2616_s10 = smov 0  }
  0x12 LB: > { %3187 = sst [smem:[#allocation24_spill]] %s2517_s27  ;;  %s2637_s11 = sadd.s32 4294967295, %s2537_s10   ;;  %s2537_s10 = sphi %s2616_s10, %s32_s10   ;;  %s2533_s9 = sphi %s2614_s9, %s3240_s9   ;;  %s2529_s30 = sphi %s2612_s30, %s3239_s30   ;;  %s2525_s29 = sphi %s2610_s29, %s3235_s29   ;;  %s2521_s28 = sphi %s2608_s28, %s3238_s28   ;;  %s2517_s27 = sphi %s2606_s27, %s3237_s27  }
  0x13   : > { %3188 = sst [smem:[#allocation25_spill]] %s2525_s29  ;;  %s1812_s12 = sadd.s32 4294967294, %s2537_s10  }
  0x14   : > { %3189 = sst [smem:[#allocation26_spill]] %s2529_s30  ;;  %p66_p0 = scmp.ne.s32.totalorder %s2521_s28, %s2517_s27 }
  0x15   : > { %3190 = sst [smem:[#allocation27_spill]] %s2637_s11  ;;  %p3155_p1 = scmp.eq.s32.totalorder %s2637_s11, 0 }
  0x16   : > { %p262_p3 = scmp.eq.s32.totalorder %s1812_s12, 1  ;;  %p1813_p5 = scmp.ge.s32.totalorder %s2537_s10, 1 }
  0x17   : > { %p2646_p4 = por %p3155_p1, %p66_p0  ;;  %p269_p7 = scmp.lt.s32.totalorder %s2537_s10, 3 }
  0x18   : > { %p2651_p6 = por %p262_p3, %p66_p0  ;;  %s2539_s16 = smov [#allocation10]  }
  0x19   : > { %s3191_s13 = scalar_select %p2646_p4, 1, 0 }
  0x1a   : > { %s3192_s14 = scalar_select %p2651_p6, 1, 0 }
  0x1b   : > { %p2656_p8 = pnand %p1813_p5, %p269_p7  ;;  %s281_s17 = sshll.u32 %s2539_s16, 4  ;;  %s2660_s17 = int_to_ptr.vmem [resolvable:$true] %s281_s17 }
  0x1c   : > { %3193 = sst [smem:[#allocation28_spill]] %s3192_s14  ;;  %s2540_s19 = smov [#allocation11]  }
  0x1d   : > { %s3194_s15 = scalar_select %p2656_p8, 1, 0 }
  0x1e   : > { %p2082_p9 = pneg %p2656_p8  ;;  %s295_s20 = sshll.u32 %s2540_s19, 4  ;;  %s2671_s20 = int_to_ptr.vmem [resolvable:$true] %s295_s20 }
  0x1f   : > { %s3196_s4 = sld [smem:[#allocation33_spill]] }
  0x20   : > { %p2667_p11 = pnand %p2082_p9, %p3155_p1 }
  0x22   : > { %s3195_s18 = scalar_select %p2667_p11, 1, 0 }
  0x23   : > { %p2681_p13 = pneg %p2667_p11 }
  0x25   : > { %s2203_s23 = scalar_lea.hbm %s3196_s4, 512 }
  0x26   : > { %p2204_p12 = scmp.ne.s32.totalorder %s3196_s4, %s2203_s23  ;;  %p2210_p5 = scmp.lt.u32.totalorder %s2203_s23, %s3196_s4 }
  0x27   : > { %s3197_s26 = scalar_select %p2681_p13, 1, 0 }
  0x28   : > { %p2206_p0 = pnand %p2681_p13, %p2204_p12 }
  0x2a   : > { %p2207_p3 = pneg %p2206_p0 }
  0x2c   : > { %p2212_p7 = pnand %p2210_p5, %p2207_p3 }
  0x2e   : > { %2215 = shalt.err (!%p2212_p7)
}
  0x2f   : > { %s2216_s19 = scalar_lea.vmem %s2660_s17, 512  ;;  %p2224_p2 = scmp.lt.s32.totalorder %s2660_s17, %s2660_s17 }
  0x30   : > { %p2217_p9 = scmp.ne.s32.totalorder %s2660_s17, %s2216_s19  ;;  %p2225_p6 = scmp.lt.s32.totalorder %s2216_s19, %s2216_s19 }
  0x32   : > { %p2219_p10 = pnand %p2217_p9, %p2681_p13  ;;  %p2226_p12 = por %p2225_p6, %p2224_p2 }
  0x34   : > { %p2220_p1 = pneg %p2219_p10 }
  0x36   : > { %p2227_p0 = pnand %p2226_p12, %p2220_p1 }
  0x38   : > { %2230 = shalt.err (!%p2227_p0)
}
  0x39   : > { %s3159_s21 = smov 128   ;;  %s3161_s22 = smov 8  }
  0x3a   : > { %2085 = dma.hbm_to_vmem [thread:$0]  (!%p2667_p11), %s3196_s4, 512, %s2660_s17, [#allocation9], %s3159_s21, %s3159_s21, %s3161_s22  }
  0x3b   : > { %s3198_s5 = sld [smem:[#allocation34_spill]] }
  0x41   : > { %s2231_s16 = scalar_lea.hbm %s3198_s5, 16 }
  0x42   : > { %p2232_p1 = scmp.ne.s32.totalorder %s3198_s5, %s2231_s16  ;;  %p2238_p10 = scmp.lt.u32.totalorder %s2231_s16, %s3198_s5 }
  0x44   : > { %p2234_p2 = pnand %p2232_p1, %p2681_p13 }
  0x46   : > { %p2235_p6 = pneg %p2234_p2 }
  0x48   : > { %p2240_p3 = pnand %p2238_p10, %p2235_p6 }
  0x4a   : > { %2243 = shalt.err (!%p2240_p3)
}
  0x4b   : > { %s2244_s17 = scalar_lea.vmem %s2671_s20, 16  ;;  %s2251_s14 = scalar_lea.vmem %s2671_s20, 32 }
  0x4c   : > { %p2245_p5 = scmp.ne.s32.totalorder %s2671_s20, %s2244_s17  ;;  %p2252_p12 = scmp.lt.s32.totalorder %s2671_s20, %s2671_s20 }
  0x4d   : > { %p2253_p0 = scmp.lt.s32.totalorder %s2251_s14, %s2244_s17 }
  0x4e   : > { %p2247_p7 = pnand %p2245_p5, %p2681_p13 }
  0x4f   : > { %p2254_p1 = por %p2253_p0, %p2252_p12 }
  0x50   : > { %p2248_p9 = pneg %p2247_p7 }
  0x52   : > { %p2255_p2 = pnand %p2254_p1, %p2248_p9 }
  0x54   : > { %2258 = shalt.err (!%p2255_p2)
}
  0x55   : > { %2088 = dma.hbm_to_vmem [thread:$0]  (!%p2667_p11), %s3198_s5, 16, %s2671_s20, [#allocation12]  }
  0x56   : > { %s44_s23 = sadd.s32 1, %s2533_s9  ;;  %s53_s24 = sadd.s32 1, %s2525_s29 }
  0x57   : > { %p46_p6 = scmp.ge.s32.totalorder %s44_s23, 2  ;;  %p60_p10 = scmp.ne.s32.totalorder %s2525_s29, %s2521_s28 }
  0x58   : > { %p61_p3 = scmp.eq.s32.totalorder %s2537_s10, 0  ;;  %p2116_p5 = scmp.lt.s32.totalorder %s2537_s10, 2 }
  0x59   : > { %s3242_s23 = smov (%p46_p6, %s44_s23), 0  ;;  %p3200_p9 = scmp.eq.s32.totalorder %s2637_s11, 1 }
  0x5a   : > { %3199 = sst [smem:[#allocation29_spill]] %s3242_s23  ;;  %p62_p7 = por %p61_p3, %p60_p10 }
  0x5b   : > { %p2739_p12 = por %p3200_p9, %p60_p10  ;;  %s48_s20 = ssub.s32 %s2533_s9, %s3242_s23 }
  0x5c   : > { %s2746_s12 = sand.u32 1, %s2525_s29   ;;  %p51_p0 = scmp.eq.s32.totalorder %s48_s20, 0 }
  0x5d   : > { %s3201_s25 = scalar_select %p2739_p12, 1, 0 }
  0x5e   : > { %p2748_p1 = pnand %p2116_p5, %p62_p7  ;;  %s3168_s19 = sand.u32 1, %s2537_s10  }
  0x5f   : > { %3202 = sst [smem:[#allocation30_spill]] %s3201_s25  ;;  %s3164_s17 = sshll.u32 %s2746_s12, 3 }
  0x60   : > { %s3203_s16 = scalar_select %p2748_p1, 1, 0 }
  0x61   : > { %s2755_s14 = scalar_select %p51_p0, %s2525_s29, %s53_s24  }
  0x62   : > { %s3165_s8 = sshll.u32 %s2533_s9, 7  ;;  %s3205_s1 = sld [smem:[#allocation32_spill]] }
  0x63   : > { %3204 = sst [smem:[#allocation31_spill]] %s2755_s14  ;;  %s358_s20 = scalar_lea.vmem [#allocation5], %s3164_s17 }
  0x64   : > { %s366_s4 = sshll.u32 %s358_s20, 4  ;;  %s2771_s5 = scalar_lea.sflag [#allocation6], %s3168_s19  ;;  %s2767_s4 = int_to_ptr.vmem [resolvable:$true] %s366_s4 }
  0x65   : > { %p2777_p6 = pneg %p2748_p1 }
  0x68   : > { %s2763_s22 = scalar_lea.hbm %s3205_s1, %s3165_s8  ;;  %s2264_s20 = scalar_lea.hbm %s3205_s1, 256 }
  0x69   : > { %s2259_s24 = scalar_lea.hbm %s2763_s22, 128  ;;  %p2265_p5 = scmp.lt.u32.totalorder %s2763_s22, %s3205_s1 }
  0x6a   : > { %p2260_p2 = scmp.ne.s32.totalorder %s2763_s22, %s2259_s24  ;;  %p2266_p7 = scmp.lt.u32.totalorder %s2264_s20, %s2259_s24 }
  0x6b   : > { %p2268_p0 = scmp.lt.u32.totalorder %s2259_s24, %s2763_s22 }
  0x6c   : > { %p2262_p10 = pnand %p2777_p6, %p2260_p2  ;;  %p2267_p9 = por %p2266_p7, %p2265_p5 }
  0x6e   : > { %p2263_p3 = pneg %p2262_p10  ;;  %p2269_p12 = por %p2268_p0, %p2267_p9 }
  0x70   : > { %p2270_p4 = pnand %p2269_p12, %p2263_p3 }
  0x72   : > { %2273 = shalt.err (!%p2270_p4)
}
  0x73   : > { %s2274_s19 = scalar_lea.vmem %s2767_s4, 128  ;;  %s2543_s21 = smov [#allocation5]  }
  0x74   : > { %p2275_p2 = scmp.ne.s32.totalorder %s2767_s4, %s2274_s19  ;;  %s2279_s27 = sshll.u32 %s2543_s21, 4  ;;  %s2280_s27 = int_to_ptr.vmem [resolvable:$false] %s2279_s27 }
  0x75   : > { %s2281_s17 = scalar_lea.vmem %s2280_s27, 256  ;;  %p2282_p11 = scmp.lt.s32.totalorder %s2767_s4, %s2280_s27 }
  0x76   : > { %p2277_p10 = pnand %p2275_p2, %p2777_p6  ;;  %p2283_p13 = scmp.lt.s32.totalorder %s2281_s17, %s2274_s19 }
  0x78   : > { %p2278_p8 = pneg %p2277_p10  ;;  %p2284_p5 = por %p2283_p13, %p2282_p11 }
  0x7a   : > { %p2285_p7 = pnand %p2284_p5, %p2278_p8 }
  0x7c   : > { %2288 = shalt.err (!%p2285_p7)
}
  0x7d   : > { %2101 = dma.hbm_to_vmem [thread:$0]  (!%p2748_p1), %s2763_s22, 128, %s2767_s4, %s2771_s5  }
  0x7e   : > { %s3207_s8 = sshll.u32 %s2533_s9, 7  ;;  %s2544_s1 = smov [#allocation13]  }
  0x7f   : > { %s2806_s21 = scalar_lea.hbm %s3149_s3, %s3207_s8  ;;  %s305_s27 = sshll.u32 %s2544_s1, 4  ;;  %s306_s27 = int_to_ptr.vmem [resolvable:$true] %s305_s27 }
  0x80   : > { %s2545_s19 = smov [#allocation14]   ;;  %s3208_s6 = sld [smem:[#allocation35_spill]] }
  0x81   : > { %s318_s17 = sshll.u32 %s2545_s19, 4  ;;  %p3209_p8 = scmp.ne.s32.totalorder %s3197_s26, 0  ;;  %s2808_s17 = int_to_ptr.vmem [resolvable:$true] %s318_s17 }
  0x86   : > { %s2289_s25 = scalar_lea.hbm %s3208_s6, 2048 }
  0x87   : > { %p2290_p4 = scmp.ne.s32.totalorder %s3208_s6, %s2289_s25  ;;  %p2296_p12 = scmp.lt.u32.totalorder %s2289_s25, %s3208_s6 }
  0x89   : > { %p2292_p11 = pnand %p2290_p4, %p3209_p8 }
  0x8b   : > { %p2293_p13 = pneg %p2292_p11 }
  0x8d   : > { %p2298_p3 = pnand %p2296_p12, %p2293_p13 }
  0x8f   : > { %2301 = shalt.err (!%p2298_p3)
}
  0x90   : > { %s2302_s1 = scalar_lea.vmem %s306_s27, 2048  ;;  %p2310_p10 = scmp.lt.s32.totalorder %s306_s27, %s306_s27 }
  0x91   : > { %p2303_p9 = scmp.ne.s32.totalorder %s306_s27, %s2302_s1  ;;  %p2311_p5 = scmp.lt.s32.totalorder %s2302_s1, %s2302_s1 }
  0x93   : > { %p2305_p0 = pnand %p2303_p9, %p3209_p8  ;;  %p2312_p7 = por %p2311_p5, %p2310_p10 }
  0x95   : > { %p2306_p2 = pneg %p2305_p0 }
  0x97   : > { %p2313_p1 = pnand %p2312_p7, %p2306_p2 }
  0x99   : > { %2316 = shalt.err (!%p2313_p1)
}
  0x9a   : > { %p3210_p4 = scmp.ne.s32.totalorder %s3195_s18, 0  ;;  %s3211_s29 = smov 8  }
  0x9b   : > { %s3212_s30 = smov 128   ;;  %s2317_s24 = scalar_lea.hbm %s3153_s7, 64 }
  0x9c   : > { %2091 = dma.hbm_to_vmem [thread:$0]  (!%p3210_p4), %s3208_s6, 2048, %s306_s27, [#allocation12], %s3212_s30, %s3212_s30, %s3211_s29  }
  0x9d   : > { %p2318_p11 = scmp.ne.s32.totalorder %s3153_s7, %s2317_s24  ;;  %p2324_p12 = scmp.lt.u32.totalorder %s2317_s24, %s3153_s7 }
  0x9f   : > { %p2320_p1 = pnand %p2318_p11, %p3209_p8 }
  0xa1   : > { %p2321_p13 = pneg %p2320_p1 }
  0xa3   : > { %p2326_p3 = pnand %p2324_p12, %p2321_p13 }
  0xa5   : > { %2329 = shalt.err (!%p2326_p3)
}
  0xa6   : > { %s2330_s27 = scalar_lea.vmem %s2808_s17, 64  ;;  %p2338_p10 = scmp.lt.s32.totalorder %s2808_s17, %s2808_s17 }
  0xa7   : > { %p2331_p9 = scmp.ne.s32.totalorder %s2808_s17, %s2330_s27  ;;  %p2339_p5 = scmp.lt.s32.totalorder %s2330_s27, %s2330_s27 }
  0xa9   : > { %p2333_p0 = pnand %p2331_p9, %p3209_p8  ;;  %p2340_p7 = por %p2339_p5, %p2338_p10 }
  0xab   : > { %p2334_p2 = pneg %p2333_p0 }
  0xad   : > { %p2341_p11 = pnand %p2340_p7, %p2334_p2 }
  0xaf   : > { %2344 = shalt.err (!%p2341_p11)
}
  0xb0   : > { %s2546_s1 = smov 16   ;;  %s2547_s11 = smov 1  }
  0xb1   : > { %2094 = dma.hbm_to_vmem [thread:$0]  (!%p3210_p4), %s3153_s7, 64, %s2808_s17, [#allocation15], %s2546_s1, %s2546_s1, %s2547_s11  }
  0xb2   : > { %s1819_s14 = sshll.u32 %s2746_s12, 5  ;;  %s1864_s8 = sshll.u32 %s2533_s9, 9 }
  0xb3   : > { %s2859_s19 = scalar_lea.hbm %s3146_s0, %s1864_s8  ;;  %s336_s4 = scalar_lea.vmem [#allocation2], %s1819_s14 }
  0xb4   : > { %s344_s22 = sshll.u32 %s336_s4, 4  ;;  %s1824_s18 = sshll.u32 %s2746_s12, 6  ;;  %s2861_s22 = int_to_ptr.vmem [resolvable:$true] %s344_s22 }
  0xb5   : > { %s333_s27 = scalar_lea.sflag [#allocation3], %s2746_s12  ;;  %s2345_s6 = scalar_lea.hbm %s2859_s19, 512 }
  0xb6   : > { %p2346_p8 = scmp.ne.s32.totalorder %s2859_s19, %s2345_s6  ;;  %s2350_s11 = scalar_lea.hbm %s3146_s0, 1024 }
  0xb7   : > { %p2351_p13 = scmp.lt.u32.totalorder %s2859_s19, %s3146_s0  ;;  %p2352_p12 = scmp.lt.u32.totalorder %s2350_s11, %s2345_s6 }
  0xb8   : > { %p2348_p4 = pnand %p2346_p8, %p2777_p6  ;;  %p2354_p9 = scmp.lt.u32.totalorder %s2345_s6, %s2859_s19 }
  0xb9   : > { %p2353_p3 = por %p2352_p12, %p2351_p13 }
  0xba   : > { %p2349_p1 = pneg %p2348_p4 }
  0xbb   : > { %p2355_p0 = por %p2354_p9, %p2353_p3 }
  0xbd   : > { %p2356_p2 = pnand %p2355_p0, %p2349_p1 }
  0xbf   : > { %2359 = shalt.err (!%p2356_p2)
}
  0xc0   : > { %s2360_s14 = scalar_lea.vmem %s2861_s22, 512  ;;  %s2548_s8 = smov [#allocation2]  }
  0xc1   : > { %p2361_p10 = scmp.ne.s32.totalorder %s2861_s22, %s2360_s14  ;;  %s2365_s24 = sshll.u32 %s2548_s8, 4  ;;  %s2366_s24 = int_to_ptr.vmem [resolvable:$false] %s2365_s24 }
  0xc2   : > { %s2367_s20 = scalar_lea.vmem %s2366_s24, 1024  ;;  %p2368_p11 = scmp.lt.s32.totalorder %s2861_s22, %s2366_s24 }
  0xc3   : > { %p2363_p5 = pnand %p2361_p10, %p2777_p6  ;;  %p2369_p8 = scmp.lt.s32.totalorder %s2367_s20, %s2360_s14 }
  0xc5   : > { %p2364_p7 = pneg %p2363_p5  ;;  %p2370_p4 = por %p2369_p8, %p2368_p11 }
  0xc7   : > { %p2371_p13 = pnand %p2370_p4, %p2364_p7 }
  0xc9   : > { %2374 = shalt.err (!%p2371_p13)
}
  0xca   : > { %p3213_p1 = scmp.ne.s32.totalorder %s3203_s16, 0  ;;  %s1865_s6 = sshll.u32 %s2533_s9, 10 }
  0xcb   : > { %s2895_s1 = scalar_lea.hbm %s3148_s2, %s1865_s6  ;;  %s377_s11 = scalar_lea.vmem [#allocation7], %s1824_s18 }
  0xcc   : > { %2098 = dma.hbm_to_vmem [thread:$0]  (!%p3213_p1), %s2859_s19, 512, %s2861_s22, %s333_s27, %s3212_s30, %s3212_s30, %s3211_s29  }
  0xcd   : > { %s384_s25 = sshll.u32 %s377_s11, 4  ;;  %s3214_s26 = sshll.u32 %s2746_s12, 3  ;;  %s2899_s25 = int_to_ptr.vmem [resolvable:$true] %s384_s25 }
  0xce   : > { %s2903_s14 = scalar_lea.vmem [#allocation8], %s3214_s26  ;;  %s2375_s22 = scalar_lea.hbm %s2895_s1, 1024 }
  0xcf   : > { %s405_s19 = sshll.u32 %s2903_s14, 4  ;;  %p2376_p12 = scmp.ne.s32.totalorder %s2895_s1, %s2375_s22  ;;  %s406_s19 = int_to_ptr.vmem [resolvable:$true] %s405_s19 }
  0xd0   : > { %s2380_s24 = scalar_lea.hbm %s3148_s2, 2048  ;;  %p2381_p0 = scmp.lt.u32.totalorder %s2895_s1, %s3148_s2 }
  0xd1   : > { %p2378_p3 = pnand %p2376_p12, %p2777_p6  ;;  %p2382_p2 = scmp.lt.u32.totalorder %s2380_s24, %s2375_s22 }
  0xd2   : > { %p2384_p5 = scmp.lt.u32.totalorder %s2375_s22, %s2895_s1 }
  0xd3   : > { %p2379_p9 = pneg %p2378_p3  ;;  %p2383_p10 = por %p2382_p2, %p2381_p0 }
  0xd5   : > { %p2385_p7 = por %p2384_p5, %p2383_p10 }
  0xd7   : > { %p2386_p11 = pnand %p2385_p7, %p2379_p9 }
  0xd9   : > { %2389 = shalt.err (!%p2386_p11)
}
  0xda   : > { %s2390_s12 = scalar_lea.vmem %s2899_s25, 1024  ;;  %s2549_s18 = smov [#allocation7]  }
  0xdb   : > { %p2391_p8 = scmp.ne.s32.totalorder %s2899_s25, %s2390_s12  ;;  %s2395_s4 = sshll.u32 %s2549_s18, 4  ;;  %s2396_s4 = int_to_ptr.vmem [resolvable:$false] %s2395_s4 }
  0xdc   : > { %s2397_s17 = scalar_lea.vmem %s2396_s4, 2048  ;;  %p2398_p12 = scmp.lt.s32.totalorder %s2899_s25, %s2396_s4 }
  0xdd   : > { %p2393_p4 = pnand %p2391_p8, %p2777_p6  ;;  %p2399_p3 = scmp.lt.s32.totalorder %s2397_s17, %s2390_s12 }
  0xdf   : > { %p2394_p13 = pneg %p2393_p4  ;;  %p2400_p0 = por %p2399_p3, %p2398_p12 }
  0xe1   : > { %p2401_p2 = pnand %p2400_p0, %p2394_p13 }
  0xe3   : > { %2404 = shalt.err (!%p2401_p2)
}
  0xe4   : > { %2104 = dma.hbm_to_vmem [thread:$0]  (!%p3213_p1), %s2895_s1, 1024, %s2899_s25, %s2771_s5, %s3212_s30, %s3212_s30, %s3211_s29  }
  0xe5   : > { %s3215_s11 = sand.u32 1, %s2537_s10   ;;  %s2405_s22 = scalar_lea.hbm %s2806_s21, 128 }
  0xe6   : > { %s395_s26 = scalar_lea.sflag [#allocation9], %s3215_s11  ;;  %p2406_p9 = scmp.ne.s32.totalorder %s2806_s21, %s2405_s22 }
  0xe7   : > { %s2410_s24 = scalar_lea.hbm %s3149_s3, 256  ;;  %p2411_p7 = scmp.lt.u32.totalorder %s2806_s21, %s3149_s3 }
  0xe8   : > { %p2408_p10 = pnand %p2406_p9, %p2777_p6  ;;  %p2412_p11 = scmp.lt.u32.totalorder %s2410_s24, %s2405_s22 }
  0xe9   : > { %p2414_p4 = scmp.lt.u32.totalorder %s2405_s22, %s2806_s21 }
  0xea   : > { %p2409_p5 = pneg %p2408_p10  ;;  %p2413_p8 = por %p2412_p11, %p2411_p7 }
  0xec   : > { %p2415_p13 = por %p2414_p4, %p2413_p8 }
  0xee   : > { %p2416_p12 = pnand %p2415_p13, %p2409_p5 }
  0xf0   : > { %2419 = shalt.err (!%p2416_p12)
}
  0xf1   : > { %s2420_s5 = scalar_lea.vmem %s406_s19, 128  ;;  %s2550_s29 = smov [#allocation8]  }
  0xf2   : > { %p2421_p3 = scmp.ne.s32.totalorder %s406_s19, %s2420_s5  ;;  %s2425_s30 = sshll.u32 %s2550_s29, 4  ;;  %s2426_s30 = int_to_ptr.vmem [resolvable:$false] %s2425_s30 }
  0xf3   : > { %s2427_s1 = scalar_lea.vmem %s2426_s30, 256  ;;  %p2428_p9 = scmp.lt.s32.totalorder %s406_s19, %s2426_s30 }
  0xf4   : > { %p2423_p0 = pnand %p2421_p3, %p2777_p6  ;;  %p2429_p10 = scmp.lt.s32.totalorder %s2427_s1, %s2420_s5 }
  0xf6   : > { %p2424_p2 = pneg %p2423_p0  ;;  %p2430_p1 = por %p2429_p10, %p2428_p9 }
  0xf8   : > { %p2431_p7 = pnand %p2430_p1, %p2424_p2 }
  0xfa   : > { %2434 = shalt.err (!%p2431_p7)
}
  0xfb   : > { %p3216_p11 = scmp.ne.s32.totalorder %s3203_s16, 0  ;;  %p3217_p5 = scmp.ne.s32.totalorder %s3194_s15, 0 }
  0xfc   : > { %s2955_s23 = sand.u32 (!%p3217_p5), 1, %s2521_s28   ;;  %p3218_p6 = scmp.ne.s32.totalorder (!%p3217_p5), %s3191_s13, 0 }
  0xfd   : > { %2107 = dma.hbm_to_vmem [thread:$0]  (!%p3216_p11), %s2806_s21, 128, %s406_s19, %s395_s26  }
  0xfe   : > { %414 = sbr.rel (%p3217_p5) target bundleno = 3187 (0xc73), region = 52  ;;  %s1830_s25 = sshll.u32 (!%p3217_p5), %s2955_s23, 5 }
  0xff   : > { %s417_s14 = scalar_lea.sflag (!%p3217_p5), [#allocation3], %s2955_s23  ;;  %s2959_s12 = scalar_lea.vmem (!%p3217_p5), [#allocation2], %s1830_s25 }
 0x105   : > { %2488 = dma.done.wait (%p3218_p6), %s417_s14, 512  }
 0x106   : > { %2490 = vsyncadd (%p3218_p6), %s417_s14, 4294966784  ;;  %s3219_s16 = sld [smem:[#allocation27_spill]]  ;;  %s2967_s21 = sshll.u32 %s2955_s23, 3 }
 0x107   : > { %s429_s18 = scalar_lea.vmem [#allocation5], %s2967_s21 }
 0x10c   : > { %s425_s15 = sand.u32 1, %s3219_s16  }
 0x10d   : > { %s426_s19 = scalar_lea.sflag [#allocation6], %s425_s15 }
 0x10e   : > { %2492 = dma.done.wait (%p3218_p6), %s426_s19, 1152  }
 0x10f   : > { %2494 = vsyncadd (%p3218_p6), %s426_s19, 4294966144  ;;  %s1832_s4 = sshll.u32 %s2955_s23, 6  ;;  %s444_s11 = scalar_lea.sflag [#allocation9], %s425_s15 }
 0x110   : > { %s2975_s17 = scalar_lea.vmem [#allocation7], %s1832_s4  ;;  %s447_s26 = scalar_lea.vmem [#allocation8], %s2967_s21 }
 0x111   : > { %2496 = dma.done.wait (%p3218_p6), %s444_s11, 128  }
 0x112   : > { %2498 = vsyncadd (%p3218_p6), %s444_s11, 4294967168  ;;  %p3220_p1 = scmp.eq.s32.totalorder %s3219_s16, 0 }
 0x114   : > { %2500 = dma.done.wait (%p3220_p1), [#allocation9], 512   ;;  %p3221_p8 = pmov %p3220_p1 }
 0x115   : > { %p3222_p4 = pmov %p3220_p1 }
 0x116   : > { %2502 = vsyncadd (%p3221_p8), [#allocation9], 4294966784 }
 0x117   : > { %2504 = dma.done.wait (%p3222_p4), [#allocation12], 2064   ;;  %p3223_p13 = pmov %p3220_p1 }
 0x118   : > { %p3224_p12 = pmov %p3220_p1 }
 0x119   : > { %2506 = vsyncadd (%p3223_p13), [#allocation12], 4294965232 }
 0x11a   : > { %2508 = dma.done.wait (%p3224_p12), [#allocation15], 64   ;;  %p3225_p3 = pmov %p3220_p1 }
 0x11b   : > { %v2551_v0 = vmov 0.0|0.0   ;;  %vm2552_vm0 = vmmov 0   ;;  %v2553_v1 = vmov 0.0   ;;  %v521_v2 = vld [vmem:[#allocation10] sm:$0xff]  ;;  %v522_v3 = vld [vmem:[#allocation10 + $0x8] sm:$0xff]  ;;  %v523_v4 = vld [vmem:[#allocation10 + $0x10] sm:$0xff] }
 0x11c   : > { %2510 = vsyncadd (%p3225_p3), [#allocation15], 4294967232  ;;  %2014 = vmatprep.subr.bf16.mxu0 %v2551_v0  ;;  %1919 = vmatprep.mubr.msk.f32.mxu0 %vm2552_vm0, %v2553_v1  ;;  %v2015_v5 = vpack.c.bf16 %v522_v3, %v521_v2  ;;  %v524_v6 = vld [vmem:[#allocation10 + $0x18] sm:$0xff]  ;;  %v511_v8 = vld [vmem:[%s429_s18] sm:$0xff]  ;;  %vm532_vm1 = vcmask 261120   ;;  %vm606_vm2 = vcmask 130048  }
 0x11d   : > { %2020 = vmatprep.subr.bf16.mxu1 %v2551_v0  ;;  %1926 = vmatprep.mubr.msk.f32.mxu1 %vm2552_vm0, %v2553_v1  ;;  %v2018_v7 = vpack.c.bf16 %v524_v6, %v523_v4  ;;  %v513_v9 = vld [vmem:[%s2975_s17] sm:$0xff]  ;;  %v514_v10 = vld [vmem:[%s2975_s17 + $0x8] sm:$0xff]  ;;  %v1839_v12 = vld [vmem:[#allocation11] ss:$0 sm:$0xff]  ;;  %s2554_s13 = smov 112   ;;  %vm682_vm3 = vcmask 64512  }
 0x11e   : > { %2016 = vmatpush3.bf16.msra.mxu0 %v2015_v5  ;;  %v2021_v11 = vpack.c.bf16 %v514_v10, %v513_v9  ;;  %v680_v16 = vld [vmem:[%s2959_s12] sm:$0xff]  ;;  %v3022_v26 = vld [vmem:[%s447_s26] sm:$0xff]  ;;  %v516_v35 = vld [vmem:[%s2975_s17 + $0x18] sm:$0xff]  ;;  %s2555_s22 = smov 96   ;;  %s2556_s27 = smov 80   ;;  %vm1606_vm4 = vcmask 392192  }
 0x11f   : > { %2017 = vmatprep.subr.bf16.mxu0 %v2551_v0  ;;  %v767_v27 = vld [vmem:[#allocation13] sm:$0xff]  ;;  %v768_v28 = vld [vmem:[#allocation13 + $0x8] sm:$0xff]  ;;  %v769_v29 = vld [vmem:[#allocation13 + $0x10] sm:$0xff]  ;;  %s2557_s8 = smov 16   ;;  %s2558_s24 = smov 32   ;;  %vm1608_vm5 = vcmask 523264  }
 0x120   : > { %2022 = vmatpush3.bf16.msra.mxu1 %v2021_v11  ;;  %v2024_v30 = vpack.c.bf16 %v768_v28, %v767_v27  ;;  %v770_v31 = vld [vmem:[#allocation13 + $0x18] sm:$0xff]  ;;  %v1846_v42 = vld [vmem:[%s2959_s12 + $0x8] sm:$0xff]  ;;  %v1015_v54 = vld [vmem:[#allocation13 + $0x30] sm:$0xff]  ;;  %s3226_s20 = sld [smem:[#allocation26_spill]]  ;;  %s2559_s6 = smov 48  }
 0x121   : > { %1929 = vmatprep.subr.mxu1 %v2553_v1  ;;  %v2027_v32 = vpack.c.bf16 %v770_v31, %v769_v29  ;;  %v515_v34 = vld [vmem:[%s2975_s17 + $0x10] sm:$0xff]  ;;  %v1014_v53 = vld [vmem:[#allocation13 + $0x28] sm:$0xff]  ;;  %v518_v62 = vld [vmem:[%s2975_s17 + $0x28] sm:$0xff]  ;;  %s3227_s5 = sld [smem:[#allocation30_spill]]  ;;  %s510_s30 = scalar_lea.vmem [#allocation16], %s2967_s21 }
 0x122   : > { %2019 = vmatpush3.bf16.msra.mxu0 %v2018_v7  ;;  %v2030_v37 = vpack.c.bf16 %v516_v35, %v515_v34  ;;  %v1013_v52 = vld [vmem:[#allocation13 + $0x20] sm:$0xff]  ;;  %v1016_v56 = vld [vmem:[#allocation13 + $0x38] sm:$0xff]  ;;  %v517_v61 = vld [vmem:[%s2975_s17 + $0x20] sm:$0xff]  ;;  %s1625_s1 = sshll.u32 %s510_s30, 4  ;;  %s1611_s15 = scalar_lea.sflag [#allocation4], %s2955_s23  ;;  %s3099_s1 = int_to_ptr.vmem [resolvable:$true] %s1625_s1 }
 0x123   : > { %2023 = vmatprep.subr.bf16.mxu0 %v2551_v0  ;;  %v2033_v55 = vpack.c.bf16 %v1014_v53, %v1013_v52  ;;  %v2036_v57 = vpack.c.bf16 %v1016_v56, %v1015_v54  ;;  %v2039_v2 = vpack.c.bf16 %v518_v62, %v517_v61  ;;  %v1851_v7 = vld [vmem:[%s2959_s12 + $0x10] sm:$0xff]  ;;  %v519_v28 = vld [vmem:[%s2975_s17 + $0x30] sm:$0xff]  ;;  %v1856_v35 = vld [vmem:[%s2959_s12 + $0x18] sm:$0xff]  ;;  %s3228_s12 = sld [smem:[#allocation36_spill]]  ;;  %s2435_s21 = scalar_lea.vmem %s3099_s1, 128 }
 0x124   : > { %p2436_p0 = scmp.ne.s32.totalorder %s3099_s1, %s2435_s21  ;;  %s2560_s19 = smov [#allocation16]  }
 0x125   : > { %1920 = vmatmul.mubr.msk.f32.vlgmr.msra.gmra.mrb[0].mxu0 %vm532_vm1, %v511_v8  ;;  %s2439_s18 = sshll.u32 %s2560_s19, 4  ;;  %s2440_s18 = int_to_ptr.vmem [resolvable:$false] %s2439_s18 }
 0x126   : > { %1942 = vmatprep.mubr.msk.f32.mxu0 %vm2552_vm0, %v2553_v1  ;;  %2025 = vmatpush3.bf16.msra.mxu0 %v2024_v30  ;;  %s1861_s29 = sshll.u32 %s3226_s20, 7  ;;  %s2441_s4 = scalar_lea.vmem %s2440_s18, 256 }
 0x127   : > { %2026 = vmatprep.subr.bf16.mxu0 %v2551_v0  ;;  %p3229_p2 = scmp.ne.s32.totalorder %s3227_s5, 0  ;;  %p2442_p7 = scmp.lt.s32.totalorder %s3099_s1, %s2440_s18 }
 0x128   : > { %p2443_p11 = scmp.lt.s32.totalorder %s2441_s4, %s2435_s21 }
 0x129   : > { %s3097_s16 = scalar_lea.hbm %s3228_s12, %s1861_s29  ;;  %p2437_p9 = pnand %p2436_p0, %p3229_p2 }
 0x12a   : > { %2028 = vmatpush3.bf16.msra.mxu0 %v2027_v32  ;;  %p2444_p5 = por %p2443_p11, %p2442_p7 }
 0x12b   : > { %2032 = vmatprep.subr.bf16.mxu0 %v2551_v0  ;;  %p2438_p10 = pneg %p2437_p9 }
 0x12d   : > { %p2445_p6 = pnand %p2444_p5, %p2438_p10 }
 0x1f8   : > { %v602_v13 = vpop.f32.mrb[0].mxu0 }
 0x1f9   : > { %v3010_v14 = vadd.f32 %v1839_v12, %v602_v13  ;;  %v1921_v15 = vpop.f32.mrb[1].mxu0 }
 0x1fb   : > { %851 = vrot.lane.b32.xlu1 %v3010_v14, %s2554_s13  ;;  %1927 = vmatmul.mubr.msk.f32.vlgmr.msra.gmra.mrb[0].mxu1 %vm606_vm2, %v3010_v14 }
 0x1fc   : > { %1931 = vmatprep.mubr.msk.f32.mxu1 %vm2552_vm0, %v2553_v1  ;;  %1930 = vmatpush3.msra.mxu1 %v3022_v26 }
 0x1fd   : > { %2029 = vmatprep.subr.bf16.mxu1 %v2551_v0 }
 0x26d   : > { %v852_v39 = vpop.permute.xlu1 %851 }
 0x2ce   : > { %v676_v17 = vpop.f32.mrb[0].mxu1 }
 0x2cf   : > { %v681_v18 = vadd.f32 %v680_v16, %v676_v17  ;;  %v1928_v19 = vpop.f32.mrb[1].mxu1 }
 0x2d0   : > { %v1261_v19 = vld [vmem:[#allocation13 + $0x48] sm:$0xff] }
 0x2d1   : > { %v683_v20 = vsel %vm682_vm3, %v681_v18, -inf }
 0x2d2   : > { %684 = vmax.xlane.f32.xlu0 %v683_v20  ;;  %v1262_v20 = vld [vmem:[#allocation13 + $0x50] sm:$0xff] }
 0x35f   : > { %v685_v21 = vpop.xlane.xlu0 %684 }
 0x360   : > { %v686_v22 = vsub.f32 %v681_v18, %v685_v21  ;;  %v1260_v18 = vld [vmem:[#allocation13 + $0x40] sm:$0xff] }
 0x361   : > { %v2042_v21 = vpack.c.bf16 %v1261_v19, %v1260_v18 }
 0x362   : > { %v687_v23 = vmul.f32 1.442695, %v686_v22  ;;  %v1263_v22 = vld [vmem:[#allocation13 + $0x58] sm:$0xff] }
 0x364   : > { %2187 = vpow2.f32 %v687_v23  ;;  %v2045_v23 = vpack.c.bf16 %v1263_v22, %v1262_v20 }
 0x36e   : > { %v2188_v24 = vpop.eup %2187 }
 0x36f   : > { %v689_v25 = vsel %vm682_vm3, %v2188_v24, 0.0 }
 0x370   : > { %690 = vadd.xlane.f32.xlu0 %v689_v25 }
 0x3fd   : > { %v691_v33 = vpop.xlane.xlu0 %690 }
 0x3fe   : > { %2189 = vrcp.f32 %v691_v33 }
 0x408   : > { %v2190_v36 = vpop.eup %2189 }
 0x409   : > { %v693_v38 = vmul.f32 %v2190_v36, %v2188_v24 }
 0x40b   : > { %1932 = vmatmul.mubr.msk.f32.vlgmr.msra.gmra.mrb[2].mxu1 %vm682_vm3, %v693_v38 }
 0x40c   : > { %2031 = vmatpush3.bf16.msra.mxu1 %v2030_v37  ;;  %1949 = vmatprep.mubr.msk.f32.mxu1 %vm2552_vm0, %v2553_v1 }
 0x40d   : > { %1952 = vmatprep.subr.mxu1 %v2553_v1 }
 0x40f   : > { %1950 = vmatmul.mubr.msk.f32.vlgmr.msra.gmra.mrb[4].mxu1 %vm606_vm2, %v852_v39 }
 0x410   : > { %1953 = vmatpush3.msra.mxu1 %v3022_v26  ;;  %1954 = vmatprep.mubr.msk.f32.mxu1 %vm2552_vm0, %v2553_v1 }
 0x411   : > { %2038 = vmatprep.subr.bf16.mxu1 %v2551_v0 }
 0x4de   : > { %v763_v40 = vpop.f32.mrb[2].mxu1 }
 0x4df   : > { %v1933_v41 = vpop.f32.mrb[3].mxu1  ;;  %1943 = vmatmul.mubr.msk.f32.vlgmr.msra.gmra.mrb[2].mxu0 %vm532_vm1, %v763_v40 }
 0x4e0   : > { %1965 = vmatprep.mubr.msk.f32.mxu0 %vm2552_vm0, %v2553_v1  ;;  %2034 = vmatpush3.bf16.msra.mxu0 %v2033_v55 }
 0x4e1   : > { %2035 = vmatprep.subr.bf16.mxu0 %v2551_v0 }
 0x4e2   : > { %v921_v43 = vpop.f32.mrb[4].mxu1 }
 0x4e3   : > { %v927_v44 = vadd.f32 %v1846_v42, %v921_v43  ;;  %v1951_v45 = vpop.f32.mrb[5].mxu1 }
 0x4e4   : > { %2037 = vmatpush3.bf16.msra.mxu0 %v2036_v57 }
 0x4e5   : > { %v928_v46 = vsel %vm682_vm3, %v927_v44, -inf  ;;  %2041 = vmatprep.subr.bf16.mxu0 %v2551_v0 }
 0x4e6   : > { %929 = vmax.xlane.f32.xlu1 %v928_v46  ;;  %v1507_v46 = vld [vmem:[#allocation13 + $0x60] sm:$0xff] }
 0x573   : > { %v930_v47 = vpop.xlane.xlu1 %929 }
 0x574   : > { %v931_v48 = vsub.f32 %v927_v44, %v930_v47  ;;  %v1848_v44 = vld [vmem:[#allocation14 + $0x1] ss:$0 sm:$0xff]  ;;  %v1509_v47 = vld [vmem:[#allocation13 + $0x70] sm:$0xff] }
 0x576   : > { %v932_v49 = vmul.f32 1.442695, %v931_v48 }
 0x578   : > { %2191 = vpow2.f32 %v932_v49  ;;  %v1510_v49 = vld [vmem:[#allocation13 + $0x78] sm:$0xff] }
 0x582   : > { %v2192_v50 = vpop.eup %2191 }
 0x583   : > { %v934_v51 = vsel %vm682_vm3, %v2192_v50, 0.0 }
 0x584   : > { %935 = vadd.xlane.f32.xlu0 %v934_v51  ;;  %v1853_v51 = vld [vmem:[#allocation14 + $0x2] ss:$0 sm:$0xff] }
 0x59a   : > { %1098 = vrot.lane.b32.xlu0 %v3010_v14, %s2555_s22 }
 0x5b2   : > { %v3048_v58 = vpop.f32.mrb[2].mxu0 }
 0x5b3   : > { %v1944_v59 = vpop.f32.mrb[3].mxu0 }
 0x611   : > { %v936_v60 = vpop.xlane.xlu0 %935 }
 0x612   : > { %2193 = vrcp.f32 %v936_v60 }
 0x615   : > { %v1099_v4 = vpop.permute.xlu0 %1098 }
 0x61c   : > { %v2194_v63 = vpop.eup %2193 }
 0x61d   : > { %v938_v3 = vmul.f32 %v2194_v63, %v2192_v50  ;;  %v2054_v50 = vpack.c.bf16 %v1510_v49, %v1509_v47 }
 0x61f   : > { %1955 = vmatmul.mubr.msk.f32.vlgmr.msra.gmra.mrb[6].mxu1 %vm682_vm3, %v938_v3  ;;  %v1843_v3 = vld [vmem:[#allocation14] ss:$0 sm:$0xff] }
 0x620   : > { %2040 = vmatpush3.bf16.msra.mxu1 %v2039_v2  ;;  %1972 = vmatprep.mubr.msk.f32.mxu1 %vm2552_vm0, %v2553_v1 }
 0x621   : > { %1975 = vmatprep.subr.mxu1 %v2553_v1 }
 0x623   : > { %1973 = vmatmul.mubr.msk.f32.vlgmr.msra.gmra.mrb[8].mxu1 %vm606_vm2, %v1099_v4 }
 0x624   : > { %1976 = vmatpush3.msra.mxu1 %v3022_v26  ;;  %1977 = vmatprep.mubr.msk.f32.mxu1 %vm2552_vm0, %v2553_v1 }
 0x625   : > { %2047 = vmatprep.subr.bf16.mxu1 %v2551_v0 }
 0x6f2   : > { %v1008_v5 = vpop.f32.mrb[6].mxu1 }
 0x6f3   : > { %v1956_v6 = vpop.f32.mrb[7].mxu1  ;;  %1966 = vmatmul.mubr.msk.f32.vlgmr.msra.gmra.mrb[4].mxu0 %vm532_vm1, %v1008_v5  ;;  %v848_v5 = vadd.f32 %v1843_v3, %v3048_v58 }
 0x6f4   : > { %1988 = vmatprep.mubr.msk.f32.mxu0 %vm2552_vm0, %v2553_v1  ;;  %2043 = vmatpush3.bf16.msra.mxu0 %v2042_v21 }
 0x6f5   : > { %2044 = vmatprep.subr.bf16.mxu0 %v2551_v0 }
 0x6f6   : > { %v1168_v8 = vpop.f32.mrb[8].mxu1 }
 0x6f7   : > { %v1174_v9 = vadd.f32 %v1851_v7, %v1168_v8  ;;  %v1974_v10 = vpop.f32.mrb[9].mxu1 }
 0x6f8   : > { %2046 = vmatpush3.bf16.msra.mxu0 %v2045_v23 }
 0x6f9   : > { %v1175_v11 = vsel %vm682_vm3, %v1174_v9, -inf  ;;  %2050 = vmatprep.subr.bf16.mxu0 %v2551_v0 }
 0x6fa   : > { %1176 = vmax.xlane.f32.xlu0 %v1175_v11 }
 0x787   : > { %v1177_v12 = vpop.xlane.xlu0 %1176 }
 0x788   : > { %v1178_v13 = vsub.f32 %v1174_v9, %v1177_v12 }
 0x78a   : > { %v1179_v15 = vmul.f32 1.442695, %v1178_v13 }
 0x78c   : > { %2195 = vpow2.f32 %v1179_v15 }
 0x796   : > { %v2196_v16 = vpop.eup %2195 }
 0x797   : > { %v1181_v17 = vsel %vm682_vm3, %v2196_v16, 0.0 }
 0x798   : > { %1182 = vadd.xlane.f32.xlu1 %v1181_v17 }
 0x7a9   : > { %1345 = vrot.lane.b32.xlu1 %v3010_v14, %s2556_s27  ;;  %v520_v14 = vld [vmem:[%s2975_s17 + $0x38] sm:$0xff] }
 0x7aa   : > { %v2048_v30 = vpack.c.bf16 %v520_v14, %v519_v28 }
 0x7c6   : > { %v1094_v24 = vpop.f32.mrb[4].mxu0 }
 0x7c7   : > { %v1967_v25 = vpop.f32.mrb[5].mxu0  ;;  %v1095_v45 = vadd.f32 %v1848_v44, %v1094_v24 }
 0x825   : > { %v1183_v27 = vpop.xlane.xlu1 %1182 }
 0x826   : > { %2197 = vrcp.f32 %v1183_v27 }
 0x829   : > { %v1346_v32 = vpop.permute.xlu1 %1345 }
 0x830   : > { %v2198_v29 = vpop.eup %2197 }
 0x831   : > { %v1185_v31 = vmul.f32 %v2198_v29, %v2196_v16 }
 0x833   : > { %1978 = vmatmul.mubr.msk.f32.vlgmr.msra.gmra.mrb[10].mxu1 %vm682_vm3, %v1185_v31 }
 0x834   : > { %2049 = vmatpush3.bf16.msra.mxu1 %v2048_v30  ;;  %1995 = vmatprep.mubr.msk.f32.mxu1 %vm2552_vm0, %v2553_v1 }
 0x835   : > { %1998 = vmatprep.subr.mxu1 %v2553_v1 }
 0x837   : > { %1996 = vmatmul.mubr.msk.f32.vlgmr.msra.gmra.mrb[12].mxu1 %vm606_vm2, %v1346_v32 }
 0x838   : > { %1999 = vmatpush3.msra.mxu1 %v3022_v26  ;;  %2000 = vmatprep.mubr.msk.f32.mxu1 %vm2552_vm0, %v2553_v1 }
 0x906   : > { %v1255_v33 = vpop.f32.mrb[10].mxu1 }
 0x907   : > { %v1979_v34 = vpop.f32.mrb[11].mxu1  ;;  %1989 = vmatmul.mubr.msk.f32.vlgmr.msra.gmra.mrb[6].mxu0 %vm532_vm1, %v1255_v33 }
 0x908   : > { %2011 = vmatprep.mubr.msk.f32.mxu0 %vm2552_vm0, %v2553_v1  ;;  %v1508_v1 = vld [vmem:[#allocation13 + $0x68] sm:$0xff] }
 0x909   : > { %v2051_v48 = vpack.c.bf16 %v1508_v1, %v1507_v46 }
 0x90a   : > { %v1415_v36 = vpop.f32.mrb[12].mxu1 }
 0x90b   : > { %v1421_v37 = vadd.f32 %v1856_v35, %v1415_v36  ;;  %v1997_v38 = vpop.f32.mrb[13].mxu1  ;;  %2052 = vmatpush3.bf16.msra.mxu0 %v2051_v48 }
 0x90c   : > { %2053 = vmatprep.subr.bf16.mxu0 %v2551_v0  ;;  %v1858_v0 = vld [vmem:[#allocation14 + $0x3] ss:$0 sm:$0xff] }
 0x90d   : > { %v1422_v39 = vsel %vm682_vm3, %v1421_v37, -inf }
 0x90e   : > { %1423 = vmax.xlane.f32.xlu1 %v1422_v39 }
 0x90f   : > { %2055 = vmatpush3.bf16.msra.mxu0 %v2054_v50 }
 0x99b   : > { %v1424_v40 = vpop.xlane.xlu1 %1423 }
 0x99c   : > { %v1425_v41 = vsub.f32 %v1421_v37, %v1424_v40 }
 0x99e   : > { %v1426_v26 = vmul.f32 1.442695, %v1425_v41 }
 0x9a0   : > { %2199 = vpow2.f32 %v1426_v26 }
 0x9aa   : > { %v2200_v42 = vpop.eup %2199 }
 0x9ab   : > { %v1428_v43 = vsel %vm682_vm3, %v2200_v42, 0.0 }
 0x9ac   : > { %1429 = vadd.xlane.f32.xlu0 %v1428_v43 }
 0x9c2   : > { %1593 = vrot.lane.b32.xlu0 %v1095_v45, %s2557_s8 }
 0x9da   : > { %v1341_v52 = vpop.f32.mrb[6].mxu0 }
 0x9db   : > { %v1342_v53 = vadd.f32 %v1853_v51, %v1341_v52  ;;  %v1990_v54 = vpop.f32.mrb[7].mxu0 }
 0x9dd   : > { %1597 = vrot.lane.b32.xlu0 %v1342_v53, %s2558_s24 }
 0xa39   : > { %v1430_v55 = vpop.xlane.xlu0 %1429 }
 0xa3a   : > { %2201 = vrcp.f32 %v1430_v55 }
 0xa3d   : > { %v1594_v2 = vpop.permute.xlu0 %1593 }
 0xa3e   : > { %v1604_v6 = vsel %vm606_vm2, %v848_v5, %v1594_v2 }
 0xa44   : > { %v2202_v56 = vpop.eup %2201 }
 0xa45   : > { %v1432_v57 = vmul.f32 %v2202_v56, %v2200_v42 }
 0xa47   : > { %2001 = vmatmul.mubr.msk.f32.vlgmr.msra.gmra.mrb[14].mxu1 %vm682_vm3, %v1432_v57 }
 0xa4f   : > { %v1598_v4 = vpop.permute.xlu0 %1597 }
 0xa50   : > { %v1605_v7 = vsel %vm532_vm1, %v1604_v6, %v1598_v4 }
 0xb1a   : > { %v1502_v59 = vpop.f32.mrb[14].mxu1 }
 0xb1b   : > { %v2002_v60 = vpop.f32.mrb[15].mxu1  ;;  %2012 = vmatmul.mubr.msk.f32.vlgmr.msra.gmra.mrb[8].mxu0 %vm532_vm1, %v1502_v59 }
 0xbee   : > { %v1588_v61 = vpop.f32.mrb[8].mxu0 }
 0xbef   : > { %v1589_v62 = vadd.f32 %v1858_v0, %v1588_v61  ;;  %v2013_v63 = vpop.f32.mrb[9].mxu0 }
 0xbf1   : > { %1601 = vrot.lane.b32.xlu0 %v1589_v62, %s2559_s6 }
 0xc63   : > { %v1602_v8 = vpop.permute.xlu0 %1601 }
 0xc64   : > { %v1607_v58 = vsel %vm1606_vm4, %v1605_v7, %v1602_v8 }
 0xc65   : > { %1609 = vst.msk [vmem:[%s510_s30] sm:$0xff] %vm1608_vm5, %v1607_v58 }
 0xc66   : > { %2448 = shalt.err (!%p2445_p6)
}
 0xc67   : > { %s2449_s23 = scalar_lea.hbm %s3097_s16, 128  ;;  %s2453_s26 = scalar_lea.hbm %s3228_s12, 256 }
 0xc68   : > { %p2450_p1 = scmp.ne.s32.totalorder %s3097_s16, %s2449_s23  ;;  %p2454_p13 = scmp.lt.u32.totalorder %s3097_s16, %s3228_s12 }
 0xc69   : > { %p2455_p12 = scmp.lt.u32.totalorder %s2453_s26, %s2449_s23  ;;  %p2457_p0 = scmp.lt.u32.totalorder %s2449_s23, %s3097_s16 }
 0xc6a   : > { %p2451_p8 = pnand %p2450_p1, %p3229_p2 }
 0xc6b   : > { %p2456_p3 = por %p2455_p12, %p2454_p13 }
 0xc6c   : > { %p2452_p4 = pneg %p2451_p8 }
 0xc6d   : > { %p2458_p9 = por %p2457_p0, %p2456_p3 }
 0xc6f   : > { %p2459_p10 = pnand %p2458_p9, %p2452_p4 }
 0xc71   : > { %2462 = shalt.err (!%p2459_p10)
}
 0xc72   : > { %2080 = dma.vmem_to_hbm [thread:$0]  (%p3229_p2), %s3099_s1, 128, %s3097_s16, %s1611_s15  }
 0xc73 PF: > { %s3230_s27 = sld [smem:[#allocation24_spill]]  ;;  %s3231_s8 = sld [smem:[#allocation28_spill]] }
 0xc74   : > { %p3233_p11 = scmp.ge.s32.totalorder %s2537_s10, 2 }
 0xc79   : > { %s1637_s24 = sand.u32 1, %s3230_s27   ;;  %p3232_p7 = scmp.ne.s32.totalorder %s3231_s8, 0 }
 0xc7a   : > { %s1638_s20 = scalar_lea.sflag [#allocation4], %s1637_s24 }
 0xc7b   : > { %p2109_p5 = pnand %p3233_p11, %p3232_p7 }
 0xc7d   : > { %2512 = dma.done.wait (!%p2109_p5), %s1638_s20, 128  }
 0xc7e   : > { %2514 = vsyncadd (!%p2109_p5), %s1638_s20, 4294967168  ;;  %s32_s10 = sadd.s32 1, %s2537_s10   ;;  %s3234_s6 = sld [smem:[#allocation25_spill]] }
 0xc7f   : > { %p29_p6 = scmp.ge.s32.totalorder %s32_s10, 4   ;;  %s3235_s29 = sld [smem:[#allocation31_spill]] }
 0xc80   : > { %s3236_s5 = sld [smem:[#allocation29_spill]]  ;;  %s3237_s27 = smov %s2521_s28 }
 0xc81   : > { %s3239_s30 = smov %s2533_s9  ;;  %31 = sbr.rel (!%p29_p6) target bundleno = 18 (0x12), region = 159 }
 0xc84   : > { %s3238_s28 = smov %s3234_s6 }
 0xc86   : > { %s3240_s9 = smov %s3236_s5 }
 0xc88   :  { %1643 = vsyncpa [#allocation3], 1 }
 0xc89   :  { %1645 = vsyncpa [#allocation3 + $0x1], 1 }
 0xc8a   :  { %1646 = vsyncpa [#allocation6], 1 }
 0xc8b   :  { %1648 = vsyncpa [#allocation6 + $0x1], 1 }
 0xc8c   :  { %1649 = vsyncpa [#allocation9], 1 }
 0xc8d   :  { %1651 = vsyncpa [#allocation9 + $0x1], 1 }
 0xc8e   :  { %1652 = vsyncpa [#allocation12], 1 }
 0xc8f   :  { %1653 = vsyncpa [#allocation15], 1 }
 0xc90   :  { %1654 = vsyncpa [#allocation4], 1 }
 0xc91   :  { %1656 = vsyncpa [#allocation4 + $0x1], 1 }

</bundles_post_ra>
